<compile_context>
chip_gen: v5e
topology: v5e:2x2
jax: 0.10.0
libtpu: 0.0.40
codegen_flags: <defaults>
</compile_context>

<pallas_src>
import functools

import jax
import jax.numpy as jnp
from jax import lax
from jax.experimental import pallas as pl
from jax.experimental.pallas import tpu as pltpu

# Deterministic parameters for the undefined sub-networks.
MS_W, MS_B = 0.9, 0.05   # modified_sim_network ~ Conv2d(1,1,k=1): scale+bias (MS_W > 0)
WM_W, WM_B = 0.5, 0.10   # weightModel          ~ elementwise sigmoid gate (> 0)
SW_B = 0.0               # supportWeightModel   ~ linear(way->1)+sigmoid, bias
EPS = 1e-12              # L2-norm epsilon (guards all-zero descriptors)
NEG = -1e30              # finite "minus infinity": below any cosine-sim value


def _round_up(x, m):
    return ((x + m - 1) // m) * m


# ---------------------------------------------------------------------------
# In-kernel helpers
# ---------------------------------------------------------------------------
def _topk_sum_last(x, k):
    """Sum of the k largest values along the last axis (keepdims=True).

    Cheapened per perf review: one max-reduce + one compare/select per step.
    Equal to sum(torch.topk(x, k).values) unless the top-k window holds exact
    duplicate values; the finite NEG sentinel keeps degenerate rows NaN-free.
    """
    acc = jnp.zeros(x.shape[:-1] + (1,), jnp.float32)
    for i in range(k):
        m = jnp.max(x, axis=-1, keepdims=True)
        acc = acc + m
        if i + 1 < k:
            x = jnp.where(x == m, NEG, x)
    return acc


# ---------------------------------------------------------------------------
# Pallas kernels
# ---------------------------------------------------------------------------
def _support_prep_kernel(s_ref, a_ref, sn_out_ref, smod_out_ref, *, way, m_real):
    # s_ref : (C, way*Mpad) f32 raw support descriptors in the padded (w, b, a)
    #         column order built by the wrapper (pad columns are zero).
    # a_ref : (1, way)      f32 surrogate linear weights of supportWeightModel.
    s = s_ref[...]
    C, wmp = s.shape
    m_pad = wmp // way

    # per-descriptor L2 normalization over channels (torch.norm(., 2, 2, True));
    # zero pad columns normalize to exactly zero.
    sn = s * lax.rsqrt(jnp.sum(s * s, axis=0, keepdims=True) + EPS)      # (C, way*Mpad)

    # class prototypes = mean over each class' *real* shot*HW descriptors
    protos = jnp.sum(sn.reshape(C, way, m_pad), axis=2) / m_real         # (C, way)

    # TODO(synk): supportWeightModel is an undefined global in the source module;
    # modeled as sigmoid(linear over the `way` similarity axis).  The surrogate
    # being linear, sum_p a_p*<proto_p, d> == <sum_p a_p*proto_p, d>, so the
    # (way, way, M) support_set_sim tensor never has to be materialized.
    aw = jnp.sum(protos * a_ref[...], axis=1, keepdims=True)             # (C, 1)
    w = jax.nn.sigmoid(jnp.sum(sn * aw, axis=0, keepdims=True) + SW_B)   # (1, way*Mpad)

    sn_out_ref[...] = sn.astype(jnp.bfloat16)
    smod_out_ref[...] = (sn * w).astype(jnp.bfloat16)


def _query_kernel(q_ref, sn_ref, smod_ref, o_ref, acc_ref, *,
                  way, shot, g, g_pad, hw, hw_pad, k):
    # q_ref    : (1, tile_hw, C) f32 raw query descriptors (zero-padded rows allowed)
    # sn_ref   : (C, way*Mpad)   bf16 normalized support, columns ordered (w, b, a),
    #                            group axis a zero-padded G -> G_pad
    # smod_ref : (C, way*Mpad)   bf16 modified support (support_set * weight)
    # o_ref    : (1, 1, way)     f32 img2class_sim row for this query
    # acc_ref  : (1, way)        f32 score accumulator across HW tiles
    ti = pl.program_id(1)

    @pl.when(ti == 0)
    def _():
        acc_ref[...] = jnp.zeros_like(acc_ref)

    m_pad = shot * g_pad
    tile_hw = q_ref.shape[1]

    # fused L2 normalization of the query descriptors (rsqrt -> EUP, eps-safe)
    q = q_ref[0]                                                        # (t, C) f32
    qn = q * lax.rsqrt(jnp.sum(q * q, axis=1, keepdims=True) + EPS)
    qb = qn.astype(jnp.bfloat16)

    # two big MXU matmuls, f32 accumulation; everything downstream operates on
    # 128-aligned static slices (no relayout reshapes, no tiny-axis reductions)
    inner = jnp.dot(qb, sn_ref[...], preferred_element_type=jnp.float32)    # (t, way*Mpad)
    base = jnp.dot(qb, smod_ref[...], preferred_element_type=jnp.float32)   # (t, way*Mpad)

    pad_cols = g_pad > g
    if pad_cols:
        g_mask = lax.broadcasted_iota(jnp.int32, (1, g_pad), 1) < g         # (1, g_pad)
        m_mask = (lax.broadcasted_iota(jnp.int32, (1, shot, g_pad), 2)
                  .reshape(1, m_pad) < g)                                    # (1, Mpad)
    pad_rows = hw_pad != hw
    if pad_rows:
        row_valid = (lax.broadcasted_iota(jnp.int32, (tile_hw, 1), 0)
                     + ti * tile_hw) < hw                                    # (t, 1)

    contribs = []
    for w in range(way):
        off = w * m_pad

        # torch view(..., HW, HW, shot).max(dim=4) == elementwise max over the
        # `shot` members of each group: full-lane VPU vmax on 128-aligned slices.
        sim_w = inner[:, off:off + g_pad]
        for b in range(1, shot):
            sim_w = jnp.maximum(sim_w, inner[:, off + b * g_pad:off + (b + 1) * g_pad])
        if pad_cols:
            sim_w = jnp.where(g_mask, sim_w, NEG)   # padded groups never win top-k

        # TODO(synk): modified_sim_network is an undefined global; modeled as
        # Conv2d(1,1,1) = scale+bias, hoisted out of top-k (exact since MS_W > 0).
        rel_w = MS_W * _topk_sum_last(sim_w, k) + (k * MS_B)                 # (t, 1)
        # TODO(synk): weightModel is an undefined global; modeled as an
        # elementwise sigmoid gate on the relation.
        wgt_w = jax.nn.sigmoid(WM_W * rel_w + WM_B)                          # (t, 1) > 0

        # score path: weight > 0  =>  topk_sum(weight*row) == weight*topk_sum(row),
        # so the (way, HW, C) "query_modified" tensor is never materialized.
        base_w = base[:, off:off + m_pad]
        if pad_cols:
            base_w = jnp.where(m_mask, base_w, NEG)  # padded columns never win top-k
        tk_w = _topk_sum_last(base_w, k)                                     # (t, 1)

        prod = wgt_w * tk_w
        if pad_rows:
            prod = jnp.where(row_valid, prod, 0.0)   # padded query rows contribute 0
        contribs.append(jnp.sum(prod, axis=0, keepdims=True))                # (1, 1)

    acc_ref[...] += jnp.concatenate(contribs, axis=1)                        # (1, way)

    @pl.when(ti == pl.num_programs(1) - 1)
    def _():
        o_ref[0] = acc_ref[...]


# ---------------------------------------------------------------------------
# pallas_call wrappers
# ---------------------------------------------------------------------------
def _support_prep(s_flat, sw_a, way, m_real):
    C, wmp = s_flat.shape
    return pl.pallas_call(
        functools.partial(_support_prep_kernel, way=way, m_real=m_real),
        out_shape=(jax.ShapeDtypeStruct((C, wmp), jnp.bfloat16),
                   jax.ShapeDtypeStruct((C, wmp), jnp.bfloat16)),
        grid=(1,),
        in_specs=[pl.BlockSpec((C, wmp), lambda i: (0, 0)),
                  pl.BlockSpec((1, way), lambda i: (0, 0))],
        out_specs=(pl.BlockSpec((C, wmp), lambda i: (0, 0)),
                   pl.BlockSpec((C, wmp), lambda i: (0, 0))),
    )(s_flat, sw_a.reshape(1, way).astype(jnp.float32))


def _img2class_scores(q_desc, sn_flat, smod_flat, *, way, shot, g, g_pad,
                      hw, hw_pad, k, tile_hw):
    Q = q_desc.shape[0]
    C = q_desc.shape[2]
    n_tiles = hw_pad // tile_hw
    out = pl.pallas_call(
        functools.partial(_query_kernel, way=way, shot=shot, g=g, g_pad=g_pad,
                          hw=hw, hw_pad=hw_pad, k=k),
        out_shape=jax.ShapeDtypeStruct((Q, 1, way), jnp.float32),
        grid=(Q, n_tiles),
        in_specs=[
            pl.BlockSpec((1, tile_hw, C), lambda qi, ti: (qi, ti, 0)),
            # support blocks are grid-invariant -> DMA'd once, kept resident.
            # (pipeline_mode=pl.Buffered(1) would drop their redundant 2nd buffer;
            #  omitted for compile-compatibility, each operand is only ~1.6 MB.)
            pl.BlockSpec(sn_flat.shape, lambda qi, ti: (0, 0)),
            pl.BlockSpec(smod_flat.shape, lambda qi, ti: (0, 0)),
        ],
        out_specs=pl.BlockSpec((1, 1, way), lambda qi, ti: (qi, 0, 0)),
        scratch_shapes=[pltpu.VMEM((1, way), jnp.float32)],
        compiler_params=pltpu.CompilerParams(
            # Q is the leading "parallel" axis: v7x shards queries over its 2 TCs.
            dimension_semantics=("parallel", "arbitrary"),
            vmem_limit_bytes=48 * 1024 * 1024,
        ),
    )(q_desc, sn_flat, smod_flat)
    return out.reshape(Q, way)


# ---------------------------------------------------------------------------
# Forward pass (== ImgtoClass_Metric.forward)
# ---------------------------------------------------------------------------
def imgtoclass_metric(x1, x2, *, way_num, shot_num, neighbor_k, sw_a, tile_hw=None):
    """x1: (Q, C, H, W) query images, x2: (way*shot, C, H, W) support images (NCHW)."""
    Q, C, H, W = x1.shape
    S = x2.shape[0]
    assert S == way_num * shot_num
    HW = H * W
    M = shot_num * HW
    G = HW  # number of torch max-groups per class (= M // shot)
    assert neighbor_k <= G and neighbor_k <= M, "neighbor_k must not exceed HW / shot*HW"
    assert MS_W > 0.0, "affine hoist through top-k requires a positive modified_sim scale"

    G_pad = _round_up(G, 128)          # lane-align every in-kernel slice boundary
    M_pad = shot_num * G_pad

    x1 = x1.astype(jnp.float32)
    x2 = x2.astype(jnp.float32)

    # queries: NCHW -> (Q, HW, C) descriptors (pure layout plumbing, stays in XLA)
    q_desc = x1.reshape(Q, C, HW).transpose(0, 2, 1)

    # support: torch's support_set has column order m = shot_idx*HW + h, and its
    # view(Q, way, HW, HW, shot).max(4) maxes over groups of `shot` consecutive
    # columns (a = m // shot, b = m % shot).  Reorder columns to (way, b, a) and
    # zero-pad the group axis a: G -> G_pad, preserving the torch grouping exactly
    # while making every in-kernel slice 128-aligned.
    s_cm = x2.reshape(way_num, shot_num, C, HW).transpose(2, 0, 1, 3)    # (C, way, shot, HW)
    s_cm = s_cm.reshape(C, way_num, M)                                   # m = s*HW + h
    s_gb = s_cm.reshape(C, way_num, G, shot_num)                         # (a, b): m = a*shot + b
    s_bg = jnp.transpose(s_gb, (0, 1, 3, 2))                             # (C, way, b, a)
    s_bg = jnp.pad(s_bg, ((0, 0), (0, 0), (0, 0), (0, G_pad - G)))
    s_flat = s_bg.reshape(C, way_num * M_pad)

    # query HW tiling: keeps the (tile, way*Mpad) f32 matmul intermediates inside
    # VMEM.  128 is safe on v5e/v6e/v7x; 256 is a good choice on v6e (128 MiB VMEM).
    if tile_hw is None:
        tile_hw = min(_round_up(HW, 8), 128)
    hw_pad = _round_up(HW, tile_hw)
    if hw_pad != HW:
        # zero descriptors normalize to zero; their rows are masked out in-kernel
        q_desc = jnp.pad(q_desc, ((0, 0), (0, hw_pad - HW), (0, 0)))

    sn_flat, smod_flat = _support_prep(s_flat, sw_a, way_num, M)

    return _img2class_scores(q_desc, sn_flat, smod_flat,
                             way=way_num, shot=shot_num, g=G, g_pad=G_pad,
                             hw=HW, hw_pad=hw_pad, k=neighbor_k, tile_hw=tile_hw)


if __name__ == "__main__":
    WAY, SHOT, K = 3, 2, 3
    C, H, W = 16, 4, 4
    Q = WAY * 2

    key = jax.random.PRNGKey(0)
    key1, key2 = jax.random.split(key)
    x1 = jax.random.normal(key1, (Q, C, H, W), jnp.float32)
    x2 = jax.random.normal(key2, (WAY * SHOT, C, H, W), jnp.float32)

    # deterministic surrogate parameter for supportWeightModel's linear layer
    sw_a = (jnp.arange(WAY, dtype=jnp.float32) - (WAY - 1) / 2.0) * 0.1

    out = imgtoclass_metric(x1, x2, way_num=WAY, shot_num=SHOT, neighbor_k=K, sw_a=sw_a)
    out = jax.block_until_ready(out)

    assert out.shape == (Q, WAY), out.shape
    assert bool(jnp.all(jnp.isfinite(out)))
    print("KERNEL_OK")
</pallas_src>

<mosaic_0001>
module attributes {stable_mosaic.version = 11 : i64} {
  func.func @_support_prep_kernel(%arg0: i32, %arg1: memref<16x768xf32, #tpu.memory_space<vmem>>, %arg2: memref<1x3xf32, #tpu.memory_space<vmem>>, %arg3: memref<16x768xbf16, #tpu.memory_space<vmem>>, %arg4: memref<16x768xbf16, #tpu.memory_space<vmem>>) attributes {dimension_semantics = [#tpu.dimension_semantics<arbitrary>], iteration_bounds = array<i64: 1>, scalar_prefetch = 0 : i64, scratch_operands = 0 : i64, tpu.core_type = #tpu.core_type<tc>, window_params = [{pipeline_mode = #tpu.pipeline_mode<synchronous>, transform_indices = @transform_0, window_bounds = array<i64: 16, 768>}, {pipeline_mode = #tpu.pipeline_mode<synchronous>, transform_indices = @transform_1, window_bounds = array<i64: 1, 3>}, {pipeline_mode = #tpu.pipeline_mode<synchronous>, transform_indices = @transform_2, window_bounds = array<i64: 16, 768>}, {pipeline_mode = #tpu.pipeline_mode<synchronous>, transform_indices = @transform_3, window_bounds = array<i64: 16, 768>}]} {
    %c0 = arith.constant 0 : index
    %c0_0 = arith.constant 0 : index
    %0 = vector.load %arg1[%c0, %c0_0] : memref<16x768xf32, #tpu.memory_space<vmem>>, vector<16x768xf32>
    %1 = arith.mulf %0, %0 : vector<16x768xf32>
    %cst = arith.constant dense<0.000000e+00> : vector<768xf32>
    %2 = vector.multi_reduction <add>, %1, %cst [0] : vector<16x768xf32> to vector<768xf32>
    %3 = vector.shape_cast %2 : vector<768xf32> to vector<1x768xf32>
    %cst_1 = arith.constant 9.99999996E-13 : f32
    %4 = vector.broadcast %cst_1 : f32 to vector<1x768xf32>
    %5 = arith.addf %3, %4 : vector<1x768xf32>
    %6 = math.rsqrt %5 : vector<1x768xf32>
    %7 = vector.broadcast %6 : vector<1x768xf32> to vector<16x768xf32>
    %8 = arith.mulf %0, %7 : vector<16x768xf32>
    %9 = vector.shape_cast %8 : vector<16x768xf32> to vector<16x3x256xf32>
    %cst_2 = arith.constant dense<0.000000e+00> : vector<16x3xf32>
    %10 = vector.multi_reduction <add>, %9, %cst_2 [2] : vector<16x3x256xf32> to vector<16x3xf32>
    %cst_3 = arith.constant 3.200000e+01 : f32
    %11 = vector.broadcast %cst_3 : f32 to vector<16x3xf32>
    %12 = arith.divf %10, %11 : vector<16x3xf32>
    %c0_4 = arith.constant 0 : index
    %c0_5 = arith.constant 0 : index
    %13 = vector.load %arg2[%c0_4, %c0_5] : memref<1x3xf32, #tpu.memory_space<vmem>>, vector<1x3xf32>
    %14 = vector.broadcast %13 : vector<1x3xf32> to vector<16x3xf32>
    %15 = arith.mulf %12, %14 : vector<16x3xf32>
    %cst_6 = arith.constant dense<0.000000e+00> : vector<16xf32>
    %16 = vector.multi_reduction <add>, %15, %cst_6 [1] : vector<16x3xf32> to vector<16xf32>
    %17 = vector.shape_cast %16 : vector<16xf32> to vector<16x1xf32>
    %18 = vector.broadcast %17 : vector<16x1xf32> to vector<16x768xf32>
    %19 = arith.mulf %8, %18 : vector<16x768xf32>
    %cst_7 = arith.constant dense<0.000000e+00> : vector<768xf32>
    %20 = vector.multi_reduction <add>, %19, %cst_7 [0] : vector<16x768xf32> to vector<768xf32>
    %21 = vector.shape_cast %20 : vector<768xf32> to vector<1x768xf32>
    %cst_8 = arith.constant 0.000000e+00 : f32
    %22 = vector.broadcast %cst_8 : f32 to vector<1x768xf32>
    %23 = arith.addf %21, %22 : vector<1x768xf32>
    %24 = arith.negf %23 : vector<1x768xf32>
    %25 = math.exp %24 : vector<1x768xf32>
    %cst_9 = arith.constant 1.000000e+00 : f32
    %26 = vector.broadcast %cst_9 : f32 to vector<1x768xf32>
    %27 = arith.addf %26, %25 : vector<1x768xf32>
    %28 = arith.divf %26, %27 : vector<1x768xf32>
    %29 = arith.truncf %8 : vector<16x768xf32> to vector<16x768xbf16>
    %c0_10 = arith.constant 0 : index
    %c0_11 = arith.constant 0 : index
    %30 = vector.load %arg3[%c0_10, %c0_11] : memref<16x768xbf16, #tpu.memory_space<vmem>>, vector<16x768xbf16>
    tpu.vector_store %arg3[%c0_10, %c0_11], %29 {strides = array<i32>} : memref<16x768xbf16, #tpu.memory_space<vmem>>, vector<16x768xbf16>,
    %31 = vector.broadcast %28 : vector<1x768xf32> to vector<16x768xf32>
    %32 = arith.mulf %8, %31 : vector<16x768xf32>
    %33 = arith.truncf %32 : vector<16x768xf32> to vector<16x768xbf16>
    %c0_12 = arith.constant 0 : index
    %c0_13 = arith.constant 0 : index
    %34 = vector.load %arg4[%c0_12, %c0_13] : memref<16x768xbf16, #tpu.memory_space<vmem>>, vector<16x768xbf16>
    tpu.vector_store %arg4[%c0_12, %c0_13], %33 {strides = array<i32>} : memref<16x768xbf16, #tpu.memory_space<vmem>>, vector<16x768xbf16>,
    return
  }
  func.func @transform_0(%arg0: i32) -> (i32, i32) {
    %c0_i32 = arith.constant 0 : i32
    %c0_i32_0 = arith.constant 0 : i32
    %c0_i32_1 = arith.constant 0 : i32
    return %c0_i32, %c0_i32_0 : i32, i32
  }
  func.func @transform_1(%arg0: i32) -> (i32, i32) {
    %c0_i32 = arith.constant 0 : i32
    %c0_i32_0 = arith.constant 0 : i32
    %c0_i32_1 = arith.constant 0 : i32
    return %c0_i32, %c0_i32_0 : i32, i32
  }
  func.func @transform_2(%arg0: i32) -> (i32, i32) {
    %c0_i32 = arith.constant 0 : i32
    %c0_i32_0 = arith.constant 0 : i32
    %c0_i32_1 = arith.constant 0 : i32
    return %c0_i32, %c0_i32_0 : i32, i32
  }
  func.func @transform_3(%arg0: i32) -> (i32, i32) {
    %c0_i32 = arith.constant 0 : i32
    %c0_i32_0 = arith.constant 0 : i32
    %c0_i32_1 = arith.constant 0 : i32
    return %c0_i32, %c0_i32_0 : i32, i32
  }
}

</mosaic_0001>

<bundles_post_ra>
// kernel: tpu_custom_call.1
= control target key start
LH: loop header
LB: loop body
LE: loop exit
PB: predicated region body
PF: predicated region fallthrough
CT: control target
= control target key end

     0   :  { %9 = vsyncpa [#allocation3], 0  ;;  %s1566_s0 = inlined_call_operand.hbm [shape: f32[16,768], index: 0, kind: input, shape index: {}]   ;;  %s1567_s1 = inlined_call_operand.hbm [shape: f32[1,3], index: 1, kind: input, shape index: {}]   ;;  %s1568_s2 = inlined_call_operand.hbm [shape: bf16[16,768], index: 2, kind: output, shape index: {0}]   ;;  %s1569_s3 = inlined_call_operand.hbm [shape: bf16[16,768], index: 3, kind: output, shape index: {1}]  }
   0x1   :  { %10 = vsyncpa [#allocation6], 0 }
   0x2   :  { %11 = vsyncpa [#allocation4], 0 }
   0x3   :  { %12 = vsyncpa [#allocation9], 0  ;;  %s17_s14 = sshll.u32 %s1566_s0, 4  ;;  %s1061_s15 = smov [#allocation2]   ;;  %s18_s14 = int_to_ptr.hbm [resolvable:$true] %s17_s14 }
   0x4   :  { %s19_s16 = sshll.u32 %s1061_s15, 4  ;;  %s31_s19 = sshll.u32 %s1567_s1, 4  ;;  %s20_s16 = int_to_ptr.vmem [resolvable:$true] %s19_s16  ;;  %s32_s19 = int_to_ptr.hbm [resolvable:$true] %s31_s19 }
   0x5   :  { %s1062_s20 = smov 768   ;;  %s1063_s21 = smov 48  }
   0x6   :  { %25 = dma.hbm_to_vmem [thread:$0]  %s18_s14, 1536, %s20_s16, [#allocation3], %s1062_s20, %s1062_s20, %s1063_s21  }
   0x7   :  { %s1064_s22 = smov [#allocation5]  }
   0x8   :  { %s33_s23 = sshll.u32 %s1064_s22, 4  ;;  %s34_s23 = int_to_ptr.vmem [resolvable:$true] %s33_s23 }
   0x9   :  { %36 = dma.hbm_to_vmem [thread:$0]  %s32_s19, 16, %s34_s23, [#allocation6]  }
   0xa   :  { %1053 = dma.done.wait [#allocation3], 1536  }
   0xb   :  { %1054 = vsyncadd [#allocation3], 4294965760 }
   0xc   :  { %1055 = dma.done.wait [#allocation6], 16  }
   0xd   :  { %1056 = vsyncadd [#allocation6], 4294967280  ;;  %v513_v0 = vlaneseq  ;;  %v918_v2 = vld [vmem:[#allocation5] ss:$0 sm:$0xff]  ;;  %v1102_v4 = vld [vmem:[#allocation2 + $0x8] sm:$0xff]  ;;  %vm190_vm13 = vcmask 1047556  }
   0xe   :  { %v1100_v3 = vld [vmem:[#allocation2] sm:$0xff]  ;;  %v1104_v5 = vld [vmem:[#allocation2 + $0x10] sm:$0xff]  ;;  %v1106_v6 = vld [vmem:[#allocation2 + $0x18] sm:$0xff]  ;;  %v58_v11 = vmul.f32 %v1102_v4, %v1102_v4  ;;  %s1069_s0 = smov [#allocation7]   ;;  %s864_s26 = sshll.u32 %s1568_s2, 4  ;;  %s865_s26 = int_to_ptr.hbm [resolvable:$true] %s864_s26 }
   0xf   :  { %v514_v1 = vshrl.u32 %v513_v0, 7  ;;  %v57_v7 = vmul.f32 %v1100_v3, %v1100_v3  ;;  %v1110_v8 = vld [vmem:[#allocation2 + $0x20] sm:$0xff]  ;;  %v1112_v9 = vld [vmem:[#allocation2 + $0x28] sm:$0xff]  ;;  %v1114_v10 = vld [vmem:[#allocation2 + $0x30] sm:$0xff]  ;;  %v59_v12 = vmul.f32 %v1104_v5, %v1104_v5  ;;  %v60_v13 = vmul.f32 %v1106_v6, %v1106_v6  ;;  %s1447_s1 = sshll.u32 %s1069_s0, 4  ;;  %s1070_s2 = smov 384   ;;  %s863_s1 = int_to_ptr.vmem [resolvable:$true] %s1447_s1 }
  0x10   :  { %v1122_v14 = vld [vmem:[#allocation2 + $0x38] sm:$0xff]  ;;  %v1124_v15 = vld [vmem:[#allocation2 + $0x40] sm:$0xff]  ;;  %v1126_v16 = vld [vmem:[#allocation2 + $0x48] sm:$0xff]  ;;  %v61_v17 = vmul.f32 %v1110_v8, %v1110_v8  ;;  %v62_v18 = vmul.f32 %v1112_v9, %v1112_v9  ;;  %v63_v19 = vmul.f32 %v1114_v10, %v1114_v10  ;;  %s1071_s27 = smov 24   ;;  %s1072_s28 = smov [#allocation8]  }
  0x11   :  { %914 = vset.pattern.permute.xlu1 %v514_v1  ;;  %v1134_v20 = vld [vmem:[#allocation2 + $0x50] sm:$0xff]  ;;  %v1136_v21 = vld [vmem:[#allocation2 + $0x58] sm:$0xff]  ;;  %v64_v22 = vmul.f32 %v1122_v14, %v1122_v14  ;;  %v65_v23 = vmul.f32 %v1124_v15, %v1124_v15  ;;  %v66_v24 = vmul.f32 %v1126_v16, %v1126_v16  ;;  %s875_s29 = sshll.u32 %s1072_s28, 4  ;;  %s877_s5 = sshll.u32 %s1569_s3, 4  ;;  %s876_s29 = int_to_ptr.vmem [resolvable:$true] %s875_s29  ;;  %s878_s5 = int_to_ptr.hbm [resolvable:$true] %s877_s5 }
  0x12   :  { %v67_v25 = vmul.f32 %v1134_v20, %v1134_v20  ;;  %v68_v26 = vmul.f32 %v1136_v21, %v1136_v21  ;;  %v69_v27 = vadd.f32 %v63_v19, %v57_v7 }
  0x13   :  { %v76_v28 = vadd.f32 %v64_v22, %v58_v11  ;;  %v83_v29 = vadd.f32 %v65_v23, %v59_v12  ;;  %v90_v30 = vadd.f32 %v66_v24, %v60_v13  ;;  %v1065_v24 = vmov 1983009808  }
  0x14   :  { %v70_v31 = vrot.slane %v69_v27, 4  ;;  %v97_v32 = vadd.f32 %v67_v25, %v61_v17  ;;  %v104_v33 = vadd.f32 %v68_v26, %v62_v18  ;;  %v195_v25 = vunpack.c.l.s4 %v1065_v24 }
  0x15   :  { %v77_v34 = vrot.slane %v76_v28, 4  ;;  %v84_v35 = vrot.slane %v83_v29, 4  ;;  %v91_v36 = vrot.slane %v90_v30, 4 }
  0x16   :  { %v71_v37 = vadd.f32 %v70_v31, %v69_v27  ;;  %v98_v38 = vrot.slane %v97_v32, 4  ;;  %v105_v39 = vrot.slane %v104_v33, 4 }
  0x17   :  { %v78_v40 = vadd.f32 %v77_v34, %v76_v28  ;;  %v85_v41 = vadd.f32 %v84_v35, %v83_v29  ;;  %v92_v42 = vadd.f32 %v91_v36, %v90_v30  ;;  %v1154_v29 = vunpack.c.0.s8 %v195_v25 }
  0x18   :  { %v72_v43 = vrot.slane %v71_v37, 2  ;;  %v99_v44 = vadd.f32 %v98_v38, %v97_v32  ;;  %v106_v45 = vadd.f32 %v105_v39, %v104_v33 }
  0x19   :  { %517 = vperm.xlu1 %914, %v918_v2   ;;  %v79_v46 = vrot.slane %v78_v40, 2  ;;  %v86_v47 = vrot.slane %v85_v41, 2  ;;  %v93_v48 = vrot.slane %v92_v42, 2 }
  0x1a   :  { %v73_v49 = vadd.f32 %v72_v43, %v71_v37  ;;  %v100_v50 = vrot.slane %v99_v44, 2  ;;  %v107_v51 = vrot.slane %v106_v45, 2 }
  0x1b   :  { %v80_v52 = vadd.f32 %v79_v46, %v78_v40  ;;  %v87_v53 = vadd.f32 %v86_v47, %v85_v41  ;;  %v94_v54 = vadd.f32 %v93_v48, %v92_v42 }
  0x1c   :  { %v74_v55 = vrot.slane %v73_v49, 1  ;;  %v101_v56 = vadd.f32 %v100_v50, %v99_v44  ;;  %v108_v57 = vadd.f32 %v107_v51, %v106_v45 }
  0x1d   :  { %v81_v58 = vrot.slane %v80_v52, 1  ;;  %v88_v59 = vrot.slane %v87_v53, 1  ;;  %v95_v60 = vrot.slane %v94_v54, 1 }
  0x1e   :  { %v75_v61 = vadd.f32 %v74_v55, %v73_v49  ;;  %v102_v62 = vrot.slane %v101_v56, 1  ;;  %v109_v63 = vrot.slane %v108_v57, 1 }
  0x1f   :  { %v82_v1 = vadd.f32 %v81_v58, %v80_v52  ;;  %v89_v2 = vadd.f32 %v88_v59, %v87_v53  ;;  %v96_v7 = vadd.f32 %v95_v60, %v94_v54 }
  0x20   :  { %v103_v11 = vadd.f32 %v102_v62, %v101_v56  ;;  %v110_v12 = vadd.f32 %v109_v63, %v108_v57  ;;  %v111_v13 = vadd.f32 1e-12, %v75_v61  ;;  %v1066_v62 = vmov 1934713408  }
  0x21   :  { %v112_v17 = vadd.f32 1e-12, %v82_v1  ;;  %v113_v18 = vadd.f32 1e-12, %v89_v2  ;;  %v114_v19 = vadd.f32 1e-12, %v96_v7  ;;  %v217_v63 = vunpack.c.l.s4 %v1066_v62 }
  0x22   :  { %v1148_v22 = vadd.f32 1e-12, %v103_v11  ;;  %919 = vrsqrt.f32 %v111_v13  ;;  %v1150_v23 = vadd.f32 1e-12, %v110_v12  ;;  %vm123_vm0 = vweird.f32 %v111_v13 }
  0x23   :  { %921 = vrsqrt.f32 %v112_v17  ;;  %vm133_vm1 = vweird.f32 %v112_v17  ;;  %vm143_vm2 = vweird.f32 %v113_v18  ;;  %vm153_vm3 = vweird.f32 %v114_v19 }
  0x24   :  { %923 = vrsqrt.f32 %v113_v18  ;;  %vm163_vm4 = vweird.f32 %v1148_v22  ;;  %vm173_vm5 = vweird.f32 %v1150_v23 }
  0x25   :  { %925 = vrsqrt.f32 %v114_v19 }
  0x26   :  { %927 = vrsqrt.f32 %v1148_v22 }
  0x27   :  { %929 = vrsqrt.f32 %v1150_v23 }
  0x28   :  { %v920_v26 = vpop.eup %919 }
  0x29   :  { %v922_v27 = vpop.eup %921  ;;  %v118_v28 = vmul.f32 %v920_v26, %v111_v13  ;;  %vm124_vm6 = vweird.f32 %v920_v26 }
  0x2a   :  { %v924_v30 = vpop.eup %923  ;;  %v128_v31 = vmul.f32 %v922_v27, %v112_v17  ;;  %vm134_vm7 = vweird.f32 %v922_v27  ;;  %vm1161_vm9 = vmor %vm123_vm0, %vm124_vm6  ;;  %vm620_vm6 = vcmask 1042434  }
  0x2b   :  { %v926_v32 = vpop.eup %925  ;;  %v119_v33 = vmul.f32 %v920_v26, %v118_v28  ;;  %v138_v34 = vmul.f32 %v924_v30, %v113_v18  ;;  %vm144_vm8 = vweird.f32 %v924_v30  ;;  %vm1166_vm11 = vmor %vm133_vm1, %vm134_vm7  ;;  %v1228_v28 = vunpack.c.0.s8 %v217_v63 }
  0x2c   :  { %v928_v35 = vpop.eup %927  ;;  %v129_v36 = vmul.f32 %v922_v27, %v128_v31  ;;  %v148_v37 = vmul.f32 %v926_v32, %v114_v19  ;;  %vm154_vm10 = vweird.f32 %v926_v32  ;;  %vm145_vm14 = vmor %vm143_vm2, %vm144_vm8  ;;  %vm622_vm7 = vcmask 1043459  }
  0x2d   :  { %v930_v38 = vpop.eup %929  ;;  %v120_v39 = vmul.f32 0.5, %v119_v33  ;;  %v139_v40 = vmul.f32 %v924_v30, %v138_v34  ;;  %v158_v41 = vmul.f32 %v928_v35, %v1148_v22  ;;  %vm164_vm12 = vweird.f32 %v928_v35  ;;  %vm155_vm0 = vmor %vm153_vm3, %vm154_vm10 }
  0x2e   :  { %v130_v42 = vmul.f32 0.5, %v129_v36  ;;  %v149_v43 = vmul.f32 %v926_v32, %v148_v37  ;;  %v168_v44 = vmul.f32 %v930_v38, %v1150_v23  ;;  %vm174_vm15 = vweird.f32 %v930_v38  ;;  %vm165_vm1 = vmor %vm163_vm4, %vm164_vm12 }
  0x2f   :  { %v121_v45 = vsub.f32 1.5, %v120_v39  ;;  %v140_v46 = vmul.f32 0.5, %v139_v40  ;;  %v159_v47 = vmul.f32 %v928_v35, %v158_v41  ;;  %vm175_vm2 = vmor %vm173_vm5, %vm174_vm15  ;;  %vm406_vm3 = vcmask 1042432  }
  0x30   :  { %v131_v49 = vsub.f32 1.5, %v130_v42  ;;  %v150_v50 = vmul.f32 0.5, %v149_v43  ;;  %v169_v51 = vmul.f32 %v930_v38, %v168_v44  ;;  %vm618_vm5 = vcmask 1041409  }
  0x31   :  { %v122_v52 = vmul.f32 %v920_v26, %v121_v45  ;;  %v141_v54 = vsub.f32 1.5, %v140_v46  ;;  %v160_v55 = vmul.f32 0.5, %v159_v47  ;;  %vm624_vm8 = vcmask 1044484  }
  0x32   :  { %v132_v56 = vmul.f32 %v922_v27, %v131_v49  ;;  %v151_v57 = vsub.f32 1.5, %v150_v50  ;;  %v170_v58 = vmul.f32 0.5, %v169_v51  ;;  %vm626_vm10 = vcmask 1045509  }
  0x33   :  { %v126_v59 = vsel %vm1161_vm9, %v920_v26, %v122_v52  ;;  %v142_v60 = vmul.f32 %v924_v30, %v141_v54  ;;  %v161_v61 = vsub.f32 1.5, %v160_v55  ;;  %vm628_vm9 = vcmask 1046534  }
  0x34   :  { %v136_v1 = vsel %vm1166_vm11, %v922_v27, %v132_v56  ;;  %v152_v2 = vmul.f32 %v926_v32, %v151_v57  ;;  %v171_v7 = vsub.f32 1.5, %v170_v58  ;;  %v1181_v11 = vmul.f32 %v126_v59, %v1114_v10 }
  0x35   :  { %v146_v12 = vsel %vm145_vm14, %v924_v30, %v142_v60  ;;  %v162_v13 = vmul.f32 %v928_v35, %v161_v61  ;;  %v1186_v17 = vmul.f32 %v136_v1, %v1122_v14  ;;  %v1189_v18 = vmul.f32 %v126_v59, %v1100_v3 }
  0x36   :  { %v156_v19 = vsel %vm155_vm0, %v926_v32, %v152_v2  ;;  %v172_v24 = vmul.f32 %v930_v38, %v171_v7  ;;  %v1192_v22 = vmul.f32 %v146_v12, %v1124_v15  ;;  %v1195_v25 = vmul.f32 %v136_v1, %v1102_v4 }
  0x37   :  { %v166_v10 = vsel %vm165_vm1, %v928_v35, %v162_v13  ;;  %v1198_v26 = vmul.f32 %v156_v19, %v1126_v16  ;;  %v1201_v23 = vmul.f32 %v146_v12, %v1104_v5  ;;  %v1204_v14 = vmul.f32 %v156_v19, %v1106_v6 }
  0x38   :  { %v176_v3 = vsel %vm175_vm2, %v930_v38, %v172_v24  ;;  %v1207_v27 = vmul.f32 %v166_v10, %v1134_v20  ;;  %v1211_v15 = vperm.slane %v1192_v22, %v1154_v29  ;;  %v1214_v4 = vmul.f32 %v166_v10, %v1110_v8 }
  0x39   :  { %v1217_v16 = vmul.f32 %v176_v3, %v1136_v21  ;;  %v1221_v5 = vperm.slane %v1198_v26, %v1154_v29  ;;  %v1224_v6 = vmul.f32 %v176_v3, %v1112_v9  ;;  %v207_v20 = vperm.slane %v1201_v23, %v1154_v29 }
  0x3a   :  { %v244_v30 = vrot.slane %v1207_v27, 4  ;;  %v189_v8 = vrot.slane %v1214_v4, 4  ;;  %v315_v21 = vperm.slane %v1204_v14, %v1154_v29  ;;  %v266_v31 = vrot.slane %v1211_v15, 4 }
  0x3b   :  { %v352_v32 = vrot.slane %v1217_v16, 4  ;;  %v212_v33 = vrot.slane %v207_v20, 4  ;;  %v298_v9 = vrot.slane %v1224_v6, 4  ;;  %v374_v35 = vrot.slane %v1221_v5, 4 }
  0x3c   :  { %v245_v34 = vsel %vm190_vm13, %v244_v30, %v1181_v11  ;;  %v191_v36 = vsel %vm190_vm13, %v189_v8, %v1189_v18  ;;  %v320_v37 = vrot.slane %v315_v21, 4  ;;  %v246_v44 = vrot.slane %v1181_v11, 4 }
  0x3d   :  { %v251_v38 = vperm.slane %v245_v34, %v1154_v29  ;;  %v353_v39 = vsel %vm190_vm13, %v352_v32, %v1186_v17  ;;  %v197_v40 = vperm.slane %v191_v36, %v1154_v29  ;;  %v299_v41 = vsel %vm190_vm13, %v298_v9, %v1195_v25 }
  0x3e   :  { %v359_v42 = vperm.slane %v353_v39, %v1154_v29  ;;  %v305_v43 = vperm.slane %v299_v41, %v1154_v29  ;;  %v256_v48 = vrot.slane %v1192_v22, 4  ;;  %v247_v63 = vsel %vm190_vm13, %v1207_v27, %v246_v44 }
  0x3f   :  { %v267_v45 = vsel %vm190_vm13, %v266_v31, %v251_v38  ;;  %v213_v46 = vsel %vm190_vm13, %v212_v33, %v197_v40  ;;  %v214_v47 = vrot.slane %v197_v40, 4  ;;  %v255_v3 = vperm.slane %v247_v63, %v1154_v29 }
  0x40   :  { %v273_v49 = vperm.slane %v267_v45, %v1228_v28  ;;  %v375_v50 = vsel %vm190_vm13, %v374_v35, %v359_v42  ;;  %v1257_v51 = vperm.slane %v213_v46, %v1228_v28  ;;  %v321_v52 = vsel %vm190_vm13, %v320_v37, %v305_v43 }
  0x41   :  { %v381_v53 = vperm.slane %v375_v50, %v1228_v28  ;;  %v1262_v54 = vperm.slane %v321_v52, %v1228_v28  ;;  %v215_v55 = vsel %vm190_vm13, %v207_v20, %v214_v47  ;;  %v322_v56 = vrot.slane %v305_v43, 4 }
  0x42   :  { %v447_v57 = vsel %vm406_vm3, %v273_v49, 0.0  ;;  %v407_v58 = vsel %vm406_vm3, %v1257_v51, 0.0  ;;  %v1269_v59 = vperm.slane %v215_v55, %v1228_v28  ;;  %v290_v13 = vrot.slane %v273_v49, 4 }
  0x43   :  { %v448_v60 = vsel %vm406_vm3, %v381_v53, 0.0  ;;  %v408_v61 = vsel %vm406_vm3, %v1262_v54, 0.0  ;;  %v323_v62 = vsel %vm190_vm13, %v315_v21, %v322_v56  ;;  %v398_v19 = vrot.slane %v381_v53, 4 }
  0x44   :  { %v449_v1 = vadd.f32 %v448_v60, %v447_v57  ;;  %v409_v2 = vadd.f32 %v408_v61, %v407_v58  ;;  %v1278_v7 = vperm.slane %v323_v62, %v1228_v28  ;;  %v417_v12 = vsel %vm406_vm3, %v1269_v59, 0.0 }
  0x45   :  { %v257_v24 = vsel %vm190_vm13, 0.0, %v256_v48  ;;  %v354_v30 = vrot.slane %v1186_v17, 4  ;;  %v291_v21 = vsel %vm190_vm13, 0.0, %v290_v13  ;;  %v399_v31 = vsel %vm190_vm13, 0.0, %v398_v19 }
  0x46   :  { %450 = vadd.xlane.f32.xlu1 %v449_v1  ;;  %410 = vadd.xlane.f32.xlu0 %v409_v2  ;;  %v418_v10 = vsel %vm406_vm3, %v1278_v7, 0.0  ;;  %v265_v20 = vperm.slane %v257_v24, %v1154_v29  ;;  %v364_v32 = vrot.slane %v1198_v26, 4  ;;  %v452_v33 = vsel %vm406_vm3, %v291_v21, 0.0 }
  0x47   :  { %v419_v8 = vadd.f32 %v418_v10, %v417_v12  ;;  %v453_v9 = vsel %vm406_vm3, %v399_v31, 0.0  ;;  %v355_v35 = vsel %vm190_vm13, %v1217_v16, %v354_v30  ;;  %v268_v40 = vrot.slane %v251_v38, 4 }
  0x48   :  { %v278_v34 = vrot.slane %v265_v20, 4  ;;  %v454_v36 = vadd.f32 %v453_v9, %v452_v33  ;;  %v363_v37 = vperm.slane %v355_v35, %v1154_v29  ;;  %v365_v39 = vsel %vm190_vm13, 0.0, %v364_v32 }
  0x49   :  { %420 = vadd.xlane.f32.xlu2 %v419_v8  ;;  %v373_v43 = vperm.slane %v365_v39, %v1154_v29  ;;  %v376_v44 = vrot.slane %v359_v42, 4  ;;  %v280_v45 = vrot.slane %v255_v3, 4  ;;  %v269_v47 = vsel %vm190_vm13, %v1211_v15, %v268_v40 }
  0x4a   :  { %v279_v41 = vsel %vm190_vm13, %v278_v34, %v255_v3  ;;  %v388_v48 = vrot.slane %v363_v37, 4  ;;  %v277_v50 = vperm.slane %v269_v47, %v1228_v28  ;;  %v192_v55 = vrot.slane %v1189_v18, 4 }
  0x4b   :  { %v1300_v46 = vperm.slane %v279_v41, %v1228_v28  ;;  %v386_v49 = vrot.slane %v373_v43, 4  ;;  %v377_v52 = vsel %vm190_vm13, %v1221_v5, %v376_v44  ;;  %v281_v53 = vsel %vm190_vm13, %v265_v20, %v280_v45 }
  0x4c   :  { %v385_v38 = vperm.slane %v377_v52, %v1228_v28  ;;  %v389_v42 = vsel %vm190_vm13, %v373_v43, %v388_v48  ;;  %v457_v15 = vsel %vm406_vm3, %v277_v50, 0.0  ;;  %v292_v57 = vrot.slane %v277_v50, 4 }
  0x4d   :  { %v387_v56 = vsel %vm190_vm13, %v386_v49, %v363_v37  ;;  %v467_v5 = vsel %vm406_vm3, %v1300_v46, 0.0  ;;  %v1321_v1 = vperm.slane %v281_v53, %v1228_v28  ;;  %v1324_v2 = vperm.slane %v389_v42, %v1228_v28 }
  0x4e   :  { %455 = vadd.xlane.f32.xlu1 %v454_v36  ;;  %v1314_v58 = vperm.slane %v387_v56, %v1228_v28  ;;  %v458_v60 = vsel %vm406_vm3, %v385_v38, 0.0  ;;  %v400_v61 = vrot.slane %v385_v38, 4  ;;  %v293_v63 = vsel %vm190_vm13, 0.0, %v292_v57 }
  0x4f   :  { %v459_v62 = vadd.f32 %v458_v60, %v457_v15  ;;  %v462_v19 = vsel %vm406_vm3, %v293_v63, 0.0  ;;  %v193_v24 = vsel %vm190_vm13, %v1214_v4, %v192_v55  ;;  %v202_v20 = vrot.slane %v1201_v23, 4 }
  0x50   :  { %v468_v12 = vsel %vm406_vm3, %v1314_v58, 0.0  ;;  %v401_v13 = vsel %vm190_vm13, 0.0, %v400_v61  ;;  %v236_v30 = vrot.slane %v1257_v51, 4  ;;  %v300_v21 = vrot.slane %v1195_v25, 4 }
  0x51   :  { %v469_v10 = vadd.f32 %v468_v12, %v467_v5  ;;  %460 = vadd.xlane.f32.xlu2 %v459_v62  ;;  %v463_v3 = vsel %vm406_vm3, %v401_v13, 0.0  ;;  %v310_v31 = vrot.slane %v1204_v14, 4  ;;  %v344_v32 = vrot.slane %v1262_v54, 4 }
  0x52   :  { %v464_v8 = vadd.f32 %v463_v3, %v462_v19  ;;  %v477_v33 = vsel %vm406_vm3, %v1321_v1, 0.0  ;;  %v201_v9 = vperm.slane %v193_v24, %v1154_v29  ;;  %v203_v34 = vsel %vm190_vm13, 0.0, %v202_v20 }
  0x53   :  { %470 = vadd.xlane.f32.xlu0 %v469_v10  ;;  %v478_v35 = vsel %vm406_vm3, %v1324_v2, 0.0  ;;  %v211_v51 = vperm.slane %v203_v34, %v1154_v29  ;;  %v301_v36 = vsel %vm190_vm13, %v1224_v6, %v300_v21  ;;  %v311_v37 = vsel %vm190_vm13, 0.0, %v310_v31 }
  0x54   :  { %v309_v54 = vperm.slane %v301_v36, %v1154_v29  ;;  %v319_v39 = vperm.slane %v311_v37, %v1154_v29  ;;  %v226_v40 = vrot.slane %v201_v9, 4  ;;  %v479_v43 = vadd.f32 %v478_v35, %v477_v33 }
  0x55   :  { %v224_v41 = vrot.slane %v211_v51, 4  ;;  %v237_v48 = vsel %vm190_vm13, 0.0, %v236_v30  ;;  %v345_v49 = vsel %vm190_vm13, 0.0, %v344_v32  ;;  %v346_v60 = vrot.slane %v1278_v7, 4 }
  0x56   :  { %465 = vadd.xlane.f32.xlu1 %v464_v8  ;;  %v332_v44 = vrot.slane %v319_v39, 4  ;;  %v334_v45 = vrot.slane %v309_v54, 4  ;;  %v227_v38 = vsel %vm190_vm13, %v211_v51, %v226_v40  ;;  %v412_v55 = vsel %vm406_vm3, %v237_v48, 0.0 }
  0x57   :  { %v225_v47 = vsel %vm190_vm13, %v224_v41, %v201_v9  ;;  %v413_v15 = vsel %vm406_vm3, %v345_v49, 0.0  ;;  %v235_v57 = vperm.slane %v227_v38, %v1228_v28  ;;  %v238_v61 = vrot.slane %v1269_v59, 4 }
  0x58   :  { %v231_v50 = vperm.slane %v225_v47, %v1228_v28  ;;  %v333_v52 = vsel %vm190_vm13, %v332_v44, %v309_v54  ;;  %v335_v53 = vsel %vm190_vm13, %v319_v39, %v334_v45  ;;  %v414_v63 = vadd.f32 %v413_v15, %v412_v55 }
  0x59   :  { %v339_v29 = vperm.slane %v333_v52, %v1228_v28  ;;  %v343_v5 = vperm.slane %v335_v53, %v1228_v28  ;;  %v437_v12 = vsel %vm406_vm3, %v235_v57, 0.0  ;;  %v239_v19 = vsel %vm190_vm13, 0.0, %v238_v61 }
  0x5a   :  { %v427_v42 = vsel %vm406_vm3, %v231_v50, 0.0  ;;  %v347_v24 = vsel %vm190_vm13, 0.0, %v346_v60  ;;  %v240_v10 = vrot.slane %v231_v50, 4  ;;  %v422_v28 = vsel %vm406_vm3, %v239_v19, 0.0 }
  0x5b   :  { %480 = vadd.xlane.f32.xlu0 %v479_v43  ;;  %v428_v56 = vsel %vm406_vm3, %v339_v29, 0.0  ;;  %v438_v13 = vsel %vm406_vm3, %v343_v5, 0.0  ;;  %v348_v3 = vrot.slane %v339_v29, 4  ;;  %v423_v7 = vsel %vm406_vm3, %v347_v24, 0.0 }
  0x5c   :  { %v429_v62 = vadd.f32 %v428_v56, %v427_v42  ;;  %v439_v20 = vadd.f32 %v438_v13, %v437_v12  ;;  %v241_v59 = vsel %vm190_vm13, 0.0, %v240_v10  ;;  %v294_v8 = vrot.slane %v1300_v46, 4 }
  0x5d   :  { %v349_v30 = vsel %vm190_vm13, 0.0, %v348_v3  ;;  %v402_v21 = vrot.slane %v1314_v58, 4  ;;  %v424_v31 = vadd.f32 %v423_v7, %v422_v28  ;;  %v432_v32 = vsel %vm406_vm3, %v241_v59, 0.0 }
  0x5e   :  { %430 = vadd.xlane.f32.xlu2 %v429_v62  ;;  %v433_v33 = vsel %vm406_vm3, %v349_v30, 0.0  ;;  %v295_v9 = vsel %vm190_vm13, 0.0, %v294_v8  ;;  %v242_v35 = vrot.slane %v235_v57, 4  ;;  %v350_v51 = vrot.slane %v343_v5, 4 }
  0x5f   :  { %v403_v34 = vsel %vm190_vm13, 0.0, %v402_v21  ;;  %v434_v36 = vadd.f32 %v433_v33, %v432_v32  ;;  %v472_v37 = vsel %vm406_vm3, %v295_v9, 0.0  ;;  %v296_v39 = vrot.slane %v1321_v1, 4 }
  0x60   :  { %v473_v46 = vsel %vm406_vm3, %v403_v34, 0.0  ;;  %v243_v58 = vsel %vm190_vm13, 0.0, %v242_v35  ;;  %v351_v54 = vsel %vm190_vm13, 0.0, %v350_v51  ;;  %v404_v40 = vrot.slane %v1324_v2, 4 }
  0x61   :  { %v474_v41 = vadd.f32 %v473_v46, %v472_v37  ;;  %v442_v43 = vsel %vm406_vm3, %v243_v58, 0.0  ;;  %v443_v44 = vsel %vm406_vm3, %v351_v54, 0.0  ;;  %v297_v45 = vsel %vm190_vm13, 0.0, %v296_v39 }
  0x62   :  { %v405_v47 = vsel %vm190_vm13, 0.0, %v404_v40  ;;  %v444_v48 = vadd.f32 %v443_v44, %v442_v43  ;;  %v482_v49 = vsel %vm406_vm3, %v297_v45, 0.0  ;;  %v1067_v2 = vmov 32.0  }
  0x63   :  { %415 = vadd.xlane.f32.xlu0 %v414_v63  ;;  %v483_v50 = vsel %vm406_vm3, %v405_v47, 0.0  ;;  %931 = vrcp.f32 %v1067_v2  ;;  %v1068_v52 = vmov 0   ;;  %vm630_vm11 = vcmask 1047559  }
  0x64   :  { %v484_v1 = vadd.f32 %v483_v50, %v482_v49  ;;  %916 = vset.pattern.permute.xlu0 %v1068_v52  ;;  %915 = vset.pattern.permute.xlu2 %v1068_v52  ;;  %vm641_vm12 = vcmask 23552  }
  0x65   :  { %917 = vset.pattern.permute.xlu1 %v1068_v52 }
  0x66   :  { %440 = vadd.xlane.f32.xlu2 %v439_v20 }
  0x69   :  { %v932_v38 = vpop.eup %931 }
  0x6a   :  { %v488_v53 = vmul.f32 32.0, %v932_v38  ;;  %vm492_vm4 = vweird.f32 %v932_v38 }
  0x6b   :  { %425 = vadd.xlane.f32.xlu0 %v424_v31 }
  0x6c   :  { %v489_v29 = vsub.f32 1.0, %v488_v53 }
  0x6e   :  { %435 = vadd.xlane.f32.xlu2 %v434_v36  ;;  %v490_v42 = vmul.f32 %v932_v38, %v489_v29 }
  0x70   :  { %v491_v56 = vadd.f32 %v932_v38, %v490_v42 }
  0x72   :  { %v493_v15 = vsel %vm492_vm4, %v932_v38, %v491_v56 }
  0x73   :  { %475 = vadd.xlane.f32.xlu0 %v474_v41 }
  0x76   :  { %445 = vadd.xlane.f32.xlu2 %v444_v48 }
  0x7b   :  { %485 = vadd.xlane.f32.xlu0 %v484_v1 }
  0x8b   :  { %v1392_v55 = vpop.permute.xlu1 %517 }
  0xb9   :  { %v451_v57 = vpop.xlane.xlu1 %450  ;;  %v411_v5 = vpop.xlane.xlu0 %410 }
  0xba   :  { %v502_v60 = vmul.f32 %v493_v15, %v451_v57  ;;  %v494_v61 = vmul.f32 %v493_v15, %v411_v5 }
  0xbc   :  { %v528_v62 = vmul.f32 %v1392_v55, %v502_v60  ;;  %v520_v63 = vmul.f32 %v1392_v55, %v494_v61  ;;  %v421_v12 = vpop.xlane.xlu2 %420 }
  0xbd   :  { %v496_v13 = vmul.f32 %v493_v15, %v421_v12 }
  0xbe   :  { %553 = vperm.xlu2 %915, %v520_v63   ;;  %577 = vperm.xlu0 %916, %v528_v62  }
  0xbf   :  { %v522_v19 = vmul.f32 %v1392_v55, %v496_v13 }
  0xc1   :  { %559 = vperm.xlu1 %917, %v522_v19   ;;  %v456_v32 = vpop.xlane.xlu1 %455 }
  0xc2   :  { %v503_v54 = vmul.f32 %v493_v15, %v456_v32 }
  0xc4   :  { %v461_v24 = vpop.xlane.xlu2 %460  ;;  %v529_v41 = vmul.f32 %v1392_v55, %v503_v54 }
  0xc5   :  { %v504_v10 = vmul.f32 %v493_v15, %v461_v24 }
  0xc6   :  { %v471_v3 = vpop.xlane.xlu0 %470 }
  0xc7   :  { %v530_v20 = vmul.f32 %v1392_v55, %v504_v10  ;;  %v506_v28 = vmul.f32 %v493_v15, %v471_v3 }
  0xc9   :  { %583 = vperm.xlu2 %915, %v530_v20   ;;  %v532_v59 = vmul.f32 %v1392_v55, %v506_v28  ;;  %v466_v46 = vpop.xlane.xlu1 %465 }
  0xca   :  { %v505_v39 = vmul.f32 %v493_v15, %v466_v46 }
  0xcc   :  { %v531_v43 = vmul.f32 %v1392_v55, %v505_v39 }
  0xce   :  { %v481_v7 = vpop.xlane.xlu0 %480 }
  0xcf   :  { %v508_v30 = vmul.f32 %v493_v15, %v481_v7 }
  0xd1   :  { %v534_v8 = vmul.f32 %v1392_v55, %v508_v30  ;;  %589 = vperm.xlu2 %915, %v532_v59   ;;  %v431_v21 = vpop.xlane.xlu2 %430 }
  0xd2   :  { %v498_v31 = vmul.f32 %v493_v15, %v431_v21 }
  0xd4   :  { %v524_v33 = vmul.f32 %v1392_v55, %v498_v31 }
  0xd6   :  { %v416_v9 = vpop.xlane.xlu0 %415  ;;  %565 = vperm.xlu1 %917, %v524_v33  }
  0xd7   :  { %v495_v34 = vmul.f32 %v493_v15, %v416_v9 }
  0xd9   :  { %v441_v35 = vpop.xlane.xlu2 %440  ;;  %v521_v36 = vmul.f32 %v1392_v55, %v495_v34 }
  0xda   :  { %v500_v51 = vmul.f32 %v493_v15, %v441_v35 }
  0xdc   :  { %v526_v37 = vmul.f32 %v1392_v55, %v500_v51 }
  0xde   :  { %v426_v58 = vpop.xlane.xlu0 %425  ;;  %571 = vperm.xlu2 %915, %v526_v37   ;;  %556 = vperm.xlu1 %917, %v521_v36  }
  0xdf   :  { %v497_v47 = vmul.f32 %v493_v15, %v426_v58 }
  0xe1   :  { %v436_v40 = vpop.xlane.xlu2 %435  ;;  %v523_v50 = vmul.f32 %v1392_v55, %v497_v47 }
  0xe2   :  { %v499_v38 = vmul.f32 %v493_v15, %v436_v40 }
  0xe4   :  { %v525_v42 = vmul.f32 %v1392_v55, %v499_v38 }
  0xe6   :  { %v476_v44 = vpop.xlane.xlu0 %475  ;;  %586 = vperm.xlu2 %915, %v531_v43   ;;  %580 = vperm.xlu1 %917, %v529_v41  }
  0xe7   :  { %v507_v45 = vmul.f32 %v493_v15, %v476_v44 }
  0xe9   :  { %v533_v48 = vmul.f32 %v1392_v55, %v507_v45  ;;  %v446_v49 = vpop.xlane.xlu2 %445 }
  0xea   :  { %v501_v1 = vmul.f32 %v493_v15, %v446_v49 }
  0xeb   :  { %592 = vperm.xlu0 %916, %v533_v48  }
  0xec   :  { %v527_v53 = vmul.f32 %v1392_v55, %v501_v1 }
  0xee   :  { %v486_v2 = vpop.xlane.xlu0 %485  ;;  %562 = vperm.xlu1 %917, %v523_v50  }
  0xef   :  { %v509_v52 = vmul.f32 %v493_v15, %v486_v2  ;;  %v601_v15 = vand.u32 127, %v513_v0 }
  0xf1   :  { %v535_v29 = vmul.f32 %v1392_v55, %v509_v52 }
  0xf3   :  { %574 = vperm.xlu0 %916, %v527_v53   ;;  %598 = vperm.xlu2 %915, %v535_v29  }
  0xf6   :  { %568 = vperm.xlu1 %917, %v525_v42  }
  0xfe   :  { %595 = vperm.xlu1 %917, %v534_v8  }
 0x118   :  { %v554_v57 = vpop.permute.xlu2 %553 }
 0x119   :  { %v602_v3 = vperm.slane %v554_v57, %v601_v15 }
 0x123   :  { %v584_v60 = vpop.permute.xlu2 %583 }
 0x124   :  { %v612_v9 = vperm.slane %v584_v60, %v601_v15 }
 0x12b   :  { %v590_v62 = vpop.permute.xlu2 %589 }
 0x12c   :  { %v614_v44 = vperm.slane %v590_v62, %v601_v15 }
 0x130   :  { %v578_v63 = vpop.permute.xlu0 %577 }
 0x131   :  { %v610_v59 = vperm.slane %v578_v63, %v601_v15 }
 0x133   :  { %v560_v56 = vpop.permute.xlu1 %559 }
 0x134   :  { %v604_v28 = vperm.slane %v560_v56, %v601_v15 }
 0x138   :  { %v572_v13 = vpop.permute.xlu2 %571 }
 0x139   :  { %v608_v35 = vperm.slane %v572_v13, %v601_v15 }
 0x140   :  { %v587_v8 = vpop.permute.xlu2 %586 }
 0x141   :  { %v613_v58 = vperm.slane %v587_v8, %v601_v15 }
 0x148   :  { %v566_v5 = vpop.permute.xlu1 %565 }
 0x149   :  { %v606_v31 = vperm.slane %v566_v5, %v601_v15 }
 0x14d   :  { %v599_v45 = vpop.permute.xlu2 %598 }
 0x14e   :  { %v617_v50 = vperm.slane %v599_v45, %v601_v15 }
 0x150   :  { %v557_v61 = vpop.permute.xlu1 %556 }
 0x151   :  { %v603_v24 = vperm.slane %v557_v61, %v601_v15 }
 0x153   :  { %v619_v20 = vsel %vm618_vm5, %v603_v24, %v602_v3 }
 0x154   :  { %v621_v30 = vsel %vm620_vm6, %v604_v28, %v619_v20 }
 0x158   :  { %v581_v12 = vpop.permute.xlu1 %580 }
 0x159   :  { %v611_v7 = vperm.slane %v581_v12, %v601_v15 }
 0x15b   :  { %v632_v0 = vsel %vm618_vm5, %v611_v7, %v610_v59 }
 0x15c   :  { %v633_v36 = vsel %vm620_vm6, %v612_v9, %v632_v0 }
 0x15d   :  { %v593_v19 = vpop.permute.xlu0 %592  ;;  %v634_v40 = vsel %vm622_vm7, %v613_v58, %v633_v36 }
 0x15e   :  { %v615_v41 = vperm.slane %v593_v19, %v601_v15  ;;  %v635_v48 = vsel %vm624_vm8, %v614_v44, %v634_v40 }
 0x160   :  { %v563_v10 = vpop.permute.xlu1 %562  ;;  %v636_v1 = vsel %vm626_vm10, %v615_v41, %v635_v48 }
 0x161   :  { %v605_v55 = vperm.slane %v563_v10, %v601_v15 }
 0x163   :  { %v623_v21 = vsel %vm622_vm7, %v605_v55, %v621_v30 }
 0x164   :  { %v625_v51 = vsel %vm624_vm8, %v606_v31, %v623_v21 }
 0x165   :  { %v575_v32 = vpop.permute.xlu0 %574 }
 0x166   :  { %v609_v37 = vperm.slane %v575_v32, %v601_v15 }
 0x168   :  { %v569_v33 = vpop.permute.xlu1 %568 }
 0x169   :  { %v607_v34 = vperm.slane %v569_v33, %v601_v15 }
 0x16b   :  { %v627_v46 = vsel %vm626_vm10, %v607_v34, %v625_v51 }
 0x16c   :  { %v629_v54 = vsel %vm628_vm9, %v608_v35, %v627_v46 }
 0x16d   :  { %v631_v39 = vsel %vm630_vm11, %v609_v37, %v629_v54 }
 0x16e   :  { %v642_v43 = vsel %vm641_vm12, %v631_v39, 0.0 }
 0x16f   :  { %643 = vadd.xlane.f32.xlu1 %v642_v43 }
 0x170   :  { %v596_v47 = vpop.permute.xlu1 %595 }
 0x171   :  { %v616_v49 = vperm.slane %v596_v47, %v601_v15 }
 0x173   :  { %v637_v2 = vsel %vm628_vm9, %v616_v49, %v636_v1 }
 0x174   :  { %v638_v52 = vsel %vm630_vm11, %v617_v50, %v637_v2 }
 0x175   :  { %v645_v38 = vsel %vm641_vm12, %v638_v52, 0.0 }
 0x176   :  { %646 = vadd.xlane.f32.xlu0 %v645_v38 }
 0x1e2   :  { %v644_v53 = vpop.xlane.xlu1 %643 }
 0x1e3   :  { %v648_v29 = vmul.f32 %v644_v53, %v1189_v18  ;;  %v649_v42 = vmul.f32 %v644_v53, %v1195_v25  ;;  %v650_v56 = vmul.f32 %v644_v53, %v1201_v23  ;;  %v651_v57 = vmul.f32 %v644_v53, %v1204_v14 }
 0x1e4   :  { %v652_v12 = vmul.f32 %v644_v53, %v1214_v4  ;;  %v653_v15 = vmul.f32 %v644_v53, %v1224_v6 }
 0x1e9   :  { %v647_v5 = vpop.xlane.xlu0 %646 }
 0x1ea   :  { %v654_v60 = vmul.f32 %v647_v5, %v1181_v11  ;;  %v655_v61 = vmul.f32 %v647_v5, %v1186_v17  ;;  %v656_v62 = vmul.f32 %v647_v5, %v1192_v22  ;;  %v657_v63 = vmul.f32 %v647_v5, %v1198_v26 }
 0x1eb   :  { %v658_v13 = vmul.f32 %v647_v5, %v1207_v27  ;;  %v659_v19 = vmul.f32 %v647_v5, %v1217_v16 }
 0x1ec   :  { %v660_v24 = vadd.f32 %v654_v60, %v648_v29  ;;  %v667_v10 = vadd.f32 %v655_v61, %v649_v42  ;;  %v674_v3 = vadd.f32 %v656_v62, %v650_v56  ;;  %v681_v20 = vadd.f32 %v657_v63, %v651_v57 }
 0x1ed   :  { %v688_v55 = vadd.f32 %v658_v13, %v652_v12  ;;  %v695_v28 = vadd.f32 %v659_v19, %v653_v15  ;;  %v822_v12 = vpack.c.bf16 %v1195_v25, %v1189_v18  ;;  %v823_v15 = vpack.c.bf16 %v1204_v14, %v1201_v23 }
 0x1ee   :  { %v661_v7 = vrot.slane %v660_v24, 4  ;;  %v668_v59 = vrot.slane %v667_v10, 4  ;;  %v675_v30 = vrot.slane %v674_v3, 4  ;;  %v682_v8 = vrot.slane %v681_v20, 4 }
 0x1ef   :  { %v689_v21 = vrot.slane %v688_v55, 4  ;;  %v696_v31 = vrot.slane %v695_v28, 4  ;;  %v824_v13 = vpack.c.bf16 %v1224_v6, %v1214_v4  ;;  %v825_v19 = vpack.c.bf16 %v1186_v17, %v1181_v11  ;;  %828 = vst [vmem:[#allocation7] sm:$0xff] %v822_v12 }
 0x1f0   :  { %v662_v0 = vadd.f32 %v661_v7, %v660_v24  ;;  %v669_v32 = vadd.f32 %v668_v59, %v667_v10  ;;  %v676_v33 = vadd.f32 %v675_v30, %v674_v3  ;;  %v683_v9 = vadd.f32 %v682_v8, %v681_v20  ;;  %829 = vst [vmem:[#allocation7 + $0x8] sm:$0xff] %v823_v15 }
 0x1f1   :  { %v690_v34 = vadd.f32 %v689_v21, %v688_v55  ;;  %v697_v35 = vadd.f32 %v696_v31, %v695_v28  ;;  %v826_v24 = vpack.c.bf16 %v1198_v26, %v1192_v22  ;;  %v827_v3 = vpack.c.bf16 %v1217_v16, %v1207_v27  ;;  %830 = vst [vmem:[#allocation7 + $0x10] sm:$0xff] %v824_v13 }
 0x1f2   :  { %v663_v51 = vrot.slane %v662_v0, 2  ;;  %v670_v36 = vrot.slane %v669_v32, 2  ;;  %v677_v37 = vrot.slane %v676_v33, 2  ;;  %v684_v46 = vrot.slane %v683_v9, 2  ;;  %831 = vst [vmem:[#allocation7 + $0x18] sm:$0xff] %v825_v19 }
 0x1f3   :  { %v691_v58 = vrot.slane %v690_v34, 2  ;;  %v698_v54 = vrot.slane %v697_v35, 2  ;;  %832 = vst [vmem:[#allocation7 + $0x20] sm:$0xff] %v826_v24 }
 0x1f4   :  { %v664_v39 = vadd.f32 %v663_v51, %v662_v0  ;;  %v671_v40 = vadd.f32 %v670_v36, %v669_v32  ;;  %v678_v41 = vadd.f32 %v677_v37, %v676_v33  ;;  %v685_v43 = vadd.f32 %v684_v46, %v683_v9  ;;  %833 = vst [vmem:[#allocation7 + $0x28] sm:$0xff] %v827_v3 }
 0x1f5   :  { %v692_v44 = vadd.f32 %v691_v58, %v690_v34  ;;  %v699_v45 = vadd.f32 %v698_v54, %v697_v35  ;;  %870 = dma.vmem_to_hbm [thread:$0]  %s863_s1, 768, %s865_s26, [#allocation4], %s1070_s2, %s1070_s2, %s1071_s27  }
 0x1f6   :  { %v665_v47 = vrot.slane %v664_v39, 1  ;;  %v672_v48 = vrot.slane %v671_v40, 1  ;;  %v679_v49 = vrot.slane %v678_v41, 1  ;;  %v686_v50 = vrot.slane %v685_v43, 1 }
 0x1f7   :  { %v693_v1 = vrot.slane %v692_v44, 1  ;;  %v700_v2 = vrot.slane %v699_v45, 1 }
 0x1f8   :  { %v666_v52 = vadd.f32 %v665_v47, %v664_v39  ;;  %v673_v38 = vadd.f32 %v672_v48, %v671_v40  ;;  %v680_v53 = vadd.f32 %v679_v49, %v678_v41  ;;  %v687_v29 = vadd.f32 %v686_v50, %v685_v43 }
 0x1f9   :  { %v694_v42 = vadd.f32 %v693_v1, %v692_v44  ;;  %v701_v56 = vadd.f32 %v700_v2, %v699_v45 }
 0x1fa   :  { %v896_v57 = vmul.f32 -1.442695, %v666_v52  ;;  %v897_v5 = vmul.f32 -1.442695, %v673_v38  ;;  %v898_v60 = vmul.f32 -1.442695, %v680_v53 }
 0x1fb   :  { %v899_v61 = vmul.f32 -1.442695, %v687_v29  ;;  %v900_v62 = vmul.f32 -1.442695, %v694_v42  ;;  %v901_v63 = vmul.f32 -1.442695, %v701_v56 }
 0x1fc   :  { %933 = vpow2.f32 %v896_v57 }
 0x1fd   :  { %935 = vpow2.f32 %v897_v5 }
 0x1fe   :  { %937 = vpow2.f32 %v898_v60 }
 0x1ff   :  { %939 = vpow2.f32 %v899_v61 }
 0x200   :  { %941 = vpow2.f32 %v900_v62 }
 0x201   :  { %943 = vpow2.f32 %v901_v63 }
 0x202   :  { %v934_v10 = vpop.eup %933 }
 0x203   :  { %v936_v20 = vpop.eup %935  ;;  %v1454_v55 = vadd.f32 1.0, %v934_v10 }
 0x204   :  { %v938_v28 = vpop.eup %937  ;;  %v1456_v7 = vadd.f32 1.0, %v936_v20 }
 0x205   :  { %v940_v59 = vpop.eup %939  ;;  %v1459_v30 = vadd.f32 1.0, %v938_v28  ;;  %945 = vrcp.f32 %v1454_v55  ;;  %v741_v32 = vand.u32 2147483647, %v1454_v55  ;;  %v743_v33 = vand.u32 2147483648, %v1454_v55 }
 0x206   :  { %v942_v8 = vpop.eup %941  ;;  %v1462_v21 = vadd.f32 1.0, %v940_v59  ;;  %947 = vrcp.f32 %v1456_v7  ;;  %v756_v9 = vand.u32 2147483647, %v1456_v7  ;;  %v758_v34 = vand.u32 2147483648, %v1456_v7 }
 0x207   :  { %v944_v31 = vpop.eup %943  ;;  %v1465_v0 = vadd.f32 1.0, %v942_v8  ;;  %949 = vrcp.f32 %v1459_v30  ;;  %vm737_vm13 = vweird.f32 %v1454_v55  ;;  %vm752_vm14 = vweird.f32 %v1456_v7 }
 0x208   :  { %v1475_v35 = vadd.f32 1.0, %v944_v31  ;;  %951 = vrcp.f32 %v1462_v21  ;;  %v771_v36 = vand.u32 2147483647, %v1459_v30  ;;  %v773_v37 = vand.u32 2147483648, %v1459_v30 }
 0x209   :  { %953 = vrcp.f32 %v1465_v0  ;;  %vm1484_vm15 = vcmp.eq.f32.partialorder %v741_v32, 8.507059e+37  ;;  %v744_v39 = vor.u32 1.1754944e-38, %v743_v33  ;;  %v788_v40 = vand.u32 2147483648, %v1462_v21 }
 0x20a   :  { %vm1490_vm0 = vcmp.eq.f32.partialorder %v756_v9, 8.507059e+37  ;;  %v759_v44 = vor.u32 1.1754944e-38, %v758_v34  ;;  %vm767_vm1 = vweird.f32 %v1459_v30  ;;  %v786_v45 = vand.u32 2147483647, %v1462_v21 }
 0x20b   :  { %v946_v51 = vpop.eup %945  ;;  %v801_v49 = vand.u32 2147483647, %v1465_v0  ;;  %v803_v50 = vand.u32 2147483648, %v1465_v0  ;;  %955 = vrcp.f32 %v1475_v35  ;;  %vm1500_vm3 = vcmp.eq.f32.partialorder %v771_v36, 8.507059e+37 }
 0x20c   :  { %v948_v46 = vpop.eup %947  ;;  %v733_v58 = vmul.f32 %v946_v51, %v1454_v55  ;;  %vm738_vm2 = vweird.f32 %v946_v51  ;;  %v774_v38 = vor.u32 1.1754944e-38, %v773_v37  ;;  %vm782_vm4 = vweird.f32 %v1462_v21 }
 0x20d   :  { %v748_v41 = vmul.f32 %v948_v46, %v1456_v7  ;;  %v950_v47 = vpop.eup %949  ;;  %vm753_vm5 = vweird.f32 %v948_v46  ;;  %v789_v42 = vor.u32 1.1754944e-38, %v788_v40  ;;  %v816_v56 = vand.u32 2147483647, %v1475_v35  ;;  %vm739_vm10 = vmor %vm737_vm13, %vm738_vm2 }
 0x20e   :  { %v734_v48 = vsub.f32 1.0, %v733_v58  ;;  %v763_v2 = vmul.f32 %v950_v47, %v1459_v30  ;;  %v952_v53 = vpop.eup %951  ;;  %vm768_vm7 = vweird.f32 %v950_v47  ;;  %vm1508_vm8 = vcmp.eq.f32.partialorder %v786_v45, 8.507059e+37  ;;  %vm754_vm11 = vmor %vm752_vm14, %vm753_vm5 }
 0x20f   :  { %v749_v1 = vsub.f32 1.0, %v748_v41  ;;  %v954_v57 = vpop.eup %953  ;;  %v778_v61 = vmul.f32 %v952_v53, %v1462_v21  ;;  %vm1513_vm9 = vcmp.eq.f32.partialorder %v801_v49, 8.507059e+37  ;;  %v804_v13 = vor.u32 1.1754944e-38, %v803_v50  ;;  %vm769_vm13 = vmor %vm767_vm1, %vm768_vm7 }
 0x210   :  { %v735_v29 = vmul.f32 %v946_v51, %v734_v48  ;;  %v764_v60 = vsub.f32 1.0, %v763_v2  ;;  %v793_v12 = vmul.f32 %v954_v57, %v1465_v0  ;;  %v818_v3 = vand.u32 2147483648, %v1475_v35 }
 0x211   :  { %v750_v5 = vmul.f32 %v948_v46, %v749_v1  ;;  %v779_v10 = vsub.f32 1.0, %v778_v61  ;;  %v956_v20 = vpop.eup %955  ;;  %vm783_vm12 = vweird.f32 %v952_v53  ;;  %vm798_vm6 = vweird.f32 %v954_v57 }
 0x212   :  { %v736_v63 = vadd.f32 %v946_v51, %v735_v29  ;;  %v765_v24 = vmul.f32 %v950_v47, %v764_v60  ;;  %v794_v59 = vsub.f32 1.0, %v793_v12  ;;  %v808_v7 = vmul.f32 %v956_v20, %v1475_v35 }
 0x213   :  { %v751_v19 = vadd.f32 %v948_v46, %v750_v5  ;;  %v780_v32 = vmul.f32 %v952_v53, %v779_v10  ;;  %vm813_vm14 = vweird.f32 %v956_v20  ;;  %vm812_vm2 = vweird.f32 %v1475_v35 }
 0x214   :  { %v740_v28 = vsel %vm739_vm10, %v946_v51, %v736_v63  ;;  %v766_v55 = vadd.f32 %v950_v47, %v765_v24  ;;  %v795_v9 = vmul.f32 %v954_v57, %v794_v59  ;;  %v809_v30 = vsub.f32 1.0, %v808_v7 }
 0x215   :  { %v745_v8 = vsel %vm1484_vm15, %v744_v39, %v740_v28  ;;  %v755_v31 = vsel %vm754_vm11, %v948_v46, %v751_v19  ;;  %v781_v51 = vadd.f32 %v952_v53, %v780_v32  ;;  %vm784_vm15 = vmor %vm782_vm4, %vm783_vm12  ;;  %vm817_vm4 = vcmp.eq.f32.partialorder %v816_v56, 8.507059e+37 }
 0x216   :  { %v760_v33 = vsel %vm1490_vm0, %v759_v44, %v755_v31  ;;  %v770_v34 = vsel %vm769_vm13, %v950_v47, %v766_v55  ;;  %v834_v36 = vmul.f32 %v745_v8, %v1189_v18  ;;  %v796_v58 = vadd.f32 %v954_v57, %v795_v9 }
 0x217   :  { %v835_v37 = vmul.f32 %v760_v33, %v1195_v25  ;;  %v775_v46 = vsel %vm1500_vm3, %v774_v38, %v770_v34  ;;  %v840_v54 = vmul.f32 %v745_v8, %v1181_v11  ;;  %v785_v39 = vsel %vm784_vm15, %v952_v53, %v781_v51  ;;  %vm814_vm3 = vmor %vm812_vm2, %vm813_vm14 }
 0x218   :  { %vm1584_vm0 = vweird.f32 %v1465_v0  ;;  %v836_v18 = vmul.f32 %v775_v46, %v1201_v23  ;;  %v841_v25 = vmul.f32 %v760_v33, %v1186_v17  ;;  %v842_v40 = vmul.f32 %v775_v46, %v1192_v22 }
 0x219   :  { %vm799_vm1 = vmor %vm1584_vm0, %vm798_vm6  ;;  %v790_v41 = vsel %vm1508_vm8, %v789_v42, %v785_v39  ;;  %v810_v43 = vmul.f32 %v956_v20, %v809_v30  ;;  %v846_v44 = vpack.c.bf16 %v835_v37, %v834_v36  ;;  %v819_v17 = vor.u32 1.1754944e-38, %v818_v3 }
 0x21a   :  { %v800_v21 = vsel %vm799_vm1, %v954_v57, %v796_v58  ;;  %v837_v45 = vmul.f32 %v790_v41, %v1204_v14  ;;  %v843_v0 = vmul.f32 %v790_v41, %v1198_v26  ;;  %v849_v47 = vpack.c.bf16 %v841_v25, %v840_v54 }
 0x21b   :  { %v805_v11 = vsel %vm1513_vm9, %v804_v13, %v800_v21  ;;  %v811_v48 = vadd.f32 %v956_v20, %v810_v43  ;;  %852 = vst [vmem:[#allocation8] sm:$0xff] %v846_v44 }
 0x21c   :  { %v847_v22 = vpack.c.bf16 %v837_v45, %v836_v18  ;;  %v850_v23 = vpack.c.bf16 %v843_v0, %v842_v40  ;;  %855 = vst [vmem:[#allocation8 + $0x18] sm:$0xff] %v849_v47  ;;  %v838_v50 = vmul.f32 %v805_v11, %v1214_v4  ;;  %v844_v14 = vmul.f32 %v805_v11, %v1207_v27 }
 0x21d   :  { %v815_v49 = vsel %vm814_vm3, %v956_v20, %v811_v48 }
 0x21e   :  { %v820_v26 = vsel %vm817_vm4, %v819_v17, %v815_v49  ;;  %853 = vst [vmem:[#allocation8 + $0x8] sm:$0xff] %v847_v22 }
 0x21f   :  { %v839_v1 = vmul.f32 %v820_v26, %v1224_v6  ;;  %v845_v2 = vmul.f32 %v820_v26, %v1217_v16  ;;  %856 = vst [vmem:[#allocation8 + $0x20] sm:$0xff] %v850_v23 }
 0x221   :  { %v848_v52 = vpack.c.bf16 %v839_v1, %v838_v50  ;;  %v851_v35 = vpack.c.bf16 %v845_v2, %v844_v14 }
 0x223   :  { %854 = vst [vmem:[#allocation8 + $0x10] sm:$0xff] %v848_v52 }
 0x224   :  { %857 = vst [vmem:[#allocation8 + $0x28] sm:$0xff] %v851_v35 }
 0x225   :  { %883 = dma.vmem_to_hbm [thread:$0]  %s876_s29, 768, %s878_s5, [#allocation9], %s1070_s2, %s1070_s2, %s1071_s27  }
 0x226   :  { %1057 = dma.done.wait [#allocation4], 768  }
 0x227   :  { %1058 = vsyncadd [#allocation4], 4294966528 }
 0x228   :  { %1059 = dma.done.wait [#allocation9], 768  }
 0x229   :  { %1060 = vsyncadd [#allocation9], 4294966528 }
 0x22a   :  { %892 = vsyncpa [#allocation3], 1 }
 0x22b   :  { %893 = vsyncpa [#allocation6], 1 }
 0x22c   :  { %894 = vsyncpa [#allocation4], 1 }
 0x22d   :  { %895 = vsyncpa [#allocation9], 1 }

</bundles_post_ra>
